<compile_context>
chip_gen: v6e
topology: v6e:2x2x1
jax: 0.10.0
libtpu: 0.0.40
codegen_flags: <defaults>
</compile_context>

<pallas_src>
import numpy as np
import jax
import jax.numpy as jnp
from jax.experimental import pallas as pl
from jax.experimental.pallas import tpu as pltpu

# ---------------- configuration (small synthetic shapes) ----------------
B = 2              # batch
C_DIM = 8          # conditioning dim
EMBED_DIM = 32     # DINO embed dim stand-in (real DINO ViT-S/16: 384)
IMG_RES = 16       # DINO input resolution stand-in (real: 224)
PATCH = 4          # patch size stand-in (real: 16)
L = (IMG_RES // PATCH) ** 2     # number of patch tokens (16)
N_HOOKS = 5        # len([2, 5, 8, 11]) + hook_patch
CMAP_DIM = 64      # DiscHead default cmap_dim
VIRTUAL_BS = 8     # BatchNormLocal virtual batch size
BN_EPS = 1e-5
LRELU_SLOPE = 0.2

P_IN = 3 * PATCH * PATCH                 # flattened patch size (48)
L_PAD = ((L + 127) // 128) * 128         # lane-dense output width (128)

IMAGENET_MEAN = (0.485, 0.456, 0.406)
IMAGENET_STD = (0.229, 0.224, 0.225)


# ------------------------- Pallas kernel ---------------------------------
def _disc_head_kernel(patches_ref, c_ref, wemb_ref, w1_ref, w9_ref,
                      wcls_ref, wmap_ref, vecc_ref, vecm_ref, out_ref):
    """One full DiscHead (grid axis = head): embed -> block(k=1) ->
    ResidualBlock(block(k=9)) -> cls conv -> conditioning inner product."""
    BL = patches_ref.shape[0]
    Bb = c_ref.shape[0]
    Ll = BL // Bb
    C = w1_ref.shape[1]
    bf16 = jnp.bfloat16

    # ---- DINO patch-embed stand-in for this hook.  (x+1)/2 and the ImageNet
    #      mean/std normalization are folded into wemb / vecc row 0 at init.
    emb = jnp.dot(patches_ref[...].astype(bf16), wemb_ref[...],
                  preferred_element_type=jnp.float32) + vecc_ref[0:1, :]     # (BL, C) f32

    # ---- make_block(C, k=1): spectral 1x1 conv -> BatchNormLocal -> LeakyReLU.
    y = jnp.dot(emb.astype(bf16), w1_ref[...],
                preferred_element_type=jnp.float32) + vecc_ref[1:2, :]
    # BatchNormLocal, single virtual-batch group (B <= virtual_bs): per-channel
    # stats over (B, L), unbiased=False, centered two-pass variance (f32).
    mu = jnp.mean(y, axis=0, keepdims=True)
    d = y - mu
    var = jnp.mean(d * d, axis=0, keepdims=True)
    y = d * (vecc_ref[2:3, :] * jax.lax.rsqrt(var + BN_EPS)) + vecc_ref[3:4, :]
    h1 = jnp.where(y > 0, y, LRELU_SLOPE * y)                                # (BL, C) f32

    # ---- ResidualBlock(make_block(C, k=9)): circular 9-tap conv as
    #      per-tap roll + matmul + accumulate (no 9x-wide activation tensor).
    #      output[l] uses input[(l + k - 4) mod L].
    h1_3 = h1.reshape(Bb, Ll, C)
    z = jnp.zeros((BL, C), jnp.float32)
    for k in range(9):
        s = (k - 4) % Ll                 # rolled[l] = h1[(l + k - 4) mod L]
        rolled = h1_3 if s == 0 else jnp.concatenate(
            [h1_3[:, s:, :], h1_3[:, :s, :]], axis=1)
        z = z + jnp.dot(rolled.reshape(BL, C).astype(bf16),
                        w9_ref[k * C:(k + 1) * C, :],
                        preferred_element_type=jnp.float32)
    z = z + vecc_ref[4:5, :]
    mu2 = jnp.mean(z, axis=0, keepdims=True)
    d2 = z - mu2
    var2 = jnp.mean(d2 * d2, axis=0, keepdims=True)
    z = d2 * (vecc_ref[5:6, :] * jax.lax.rsqrt(var2 + BN_EPS)) + vecc_ref[6:7, :]
    z = jnp.where(z > 0, z, LRELU_SLOPE * z)
    r = z + h1                            # residual; the 1/sqrt(2) is folded into wcls

    # ---- cls 1x1 conv, conditioning projection (1/sqrt(cmap_dim) folded into wmap),
    #      and per-token inner product over cmap channels.
    o = jnp.dot(r.astype(bf16), wcls_ref[...],
                preferred_element_type=jnp.float32) + vecm_ref[0:1, :]       # (BL, cmap)
    cmap = jnp.dot(c_ref[...], wmap_ref[...],
                   preferred_element_type=jnp.float32) + vecm_ref[1:2, :]    # (B, cmap)
    logit = jnp.sum(o.reshape(Bb, Ll, CMAP_DIM) * cmap[:, None, :], axis=-1)  # (B, L)

    # lane-dense unmasked store: pad L -> L_PAD; wrapper slices the padding off.
    out_ref[...] = jnp.concatenate(
        [logit, jnp.zeros((Bb, L_PAD - Ll), jnp.float32)], axis=-1)


# ------------------------- Pallas wrapper --------------------------------
def fused_forward(patches, c, p):
    # grid over heads, "parallel" (heads are fully independent; BN stats are
    # per head).  Shared inputs use constant index_maps -> fetched once.
    # TODO(synk): for repeated calls with frozen weights, cross-call weight
    # residency (P10-style prefetch) would hide the weight DMA entirely.
    return pl.pallas_call(
        _disc_head_kernel,
        grid=(N_HOOKS,),
        in_specs=[
            pl.BlockSpec((B * L, P_IN), lambda h: (0, 0)),                    # patches (shared)
            pl.BlockSpec((B, C_DIM), lambda h: (0, 0)),                       # c (shared)
            pl.BlockSpec((None, P_IN, EMBED_DIM), lambda h: (h, 0, 0)),       # w_emb[h]
            pl.BlockSpec((None, EMBED_DIM, EMBED_DIM), lambda h: (h, 0, 0)),  # w1[h]
            pl.BlockSpec((None, 9 * EMBED_DIM, EMBED_DIM), lambda h: (h, 0, 0)),  # w9[h]
            pl.BlockSpec((None, EMBED_DIM, CMAP_DIM), lambda h: (h, 0, 0)),   # wcls[h]
            pl.BlockSpec((None, C_DIM, CMAP_DIM), lambda h: (h, 0, 0)),       # wmap[h]
            pl.BlockSpec((None, 7, EMBED_DIM), lambda h: (h, 0, 0)),          # per-C vectors
            pl.BlockSpec((None, 2, CMAP_DIM), lambda h: (h, 0, 0)),           # per-cmap vectors
        ],
        out_specs=pl.BlockSpec((None, B, L_PAD), lambda h: (h, 0, 0)),
        out_shape=jax.ShapeDtypeStruct((N_HOOKS, B, L_PAD), jnp.float32),
        compiler_params=pltpu.CompilerParams(
            dimension_semantics=("parallel",),
            vmem_limit_bytes=32 * 1024 * 1024),
    )(patches, c, p['w_emb'], p['w1'], p['w9'], p['wcls'], p['wmap'],
      p['vecc'], p['vecm'])


# ------------------------- parameter setup (glue) ------------------------
def _spectral_normalize(w, key, eps=1e-12):
    """SpectralNorm(dim=0, n_power_iterations=1) semantics on a fresh weight."""
    out_dim = w.shape[0]
    w_mat = w.reshape(out_dim, -1)
    u = jax.random.normal(key, (out_dim,), jnp.float32)
    u = u / (jnp.linalg.norm(u) + eps)
    v = w_mat.T @ u
    v = v / (jnp.linalg.norm(v) + eps)
    u = w_mat @ v
    u = u / (jnp.linalg.norm(u) + eps)
    sigma = u @ (w_mat @ v)
    return w / sigma


def init_params(key):
    keys = list(jax.random.split(key, N_HOOKS * 12))
    ki = iter(keys)

    def randn(shape, scale=1.0):
        return scale * jax.random.normal(next(ki), shape, jnp.float32)

    C = EMBED_DIM
    mean = np.asarray(IMAGENET_MEAN, np.float32)
    std = np.asarray(IMAGENET_STD, np.float32)
    ch = np.repeat(np.arange(3), PATCH * PATCH)
    a = jnp.asarray((0.5 / std)[ch].astype(np.float32))                # (p_in,)
    boff = jnp.asarray(((0.5 - mean) / std)[ch].astype(np.float32))    # (p_in,)
    inv_sqrt2 = np.float32(1.0 / np.sqrt(2.0))
    inv_sqrt_cmap = np.float32(1.0 / np.sqrt(CMAP_DIM))

    wemb_l, w1_l, w9_l, wcls_l, wmap_l, vecc_l, vecm_l = ([] for _ in range(7))
    for _ in range(N_HOOKS):
        # patch-embed stand-in; fold (x+1)/2 + ImageNet normalize into weight/bias.
        w_embed_raw = randn((P_IN, C), 1.0 / np.sqrt(P_IN))
        wemb_l.append(a[:, None] * w_embed_raw)
        b_embed = boff @ w_embed_raw                                    # (C,)

        # block 1: SpectralConv1d(C, C, k=1)
        w1 = _spectral_normalize(randn((C, C, 1), 1.0 / np.sqrt(C)), next(ki))
        w1_l.append(w1[:, :, 0].T)                                      # (C_in, C_out)
        b1 = randn((C,), 0.05)

        # residual block: SpectralConv1d(C, C, k=9, circular); taps stacked on rows.
        w9 = _spectral_normalize(randn((C, C, 9), 1.0 / np.sqrt(9 * C)), next(ki))
        w9_l.append(jnp.concatenate([w9[:, :, k].T for k in range(9)], axis=0))  # (9C, C)
        b9 = randn((C,), 0.05)

        # cls: SpectralConv1d(C, cmap_dim, k=1); residual 1/sqrt(2) folded in.
        wcls = _spectral_normalize(randn((CMAP_DIM, C, 1), 1.0 / np.sqrt(C)), next(ki))
        wcls_l.append(wcls[:, :, 0].T * inv_sqrt2)                      # (C, cmap)
        bcls = randn((CMAP_DIM,), 0.05)

        # cmapper: FullyConnectedLayer(c_dim, cmap_dim); weight_gain and
        # 1/sqrt(cmap_dim) folded; bias 0.
        wmap = randn((CMAP_DIM, C_DIM), 1.0)
        wmap_l.append(wmap.T * (np.float32(1.0 / np.sqrt(C_DIM)) * inv_sqrt_cmap))
        bmap = jnp.zeros((CMAP_DIM,), jnp.float32)

        g1 = jnp.ones((C,), jnp.float32)
        be1 = jnp.zeros((C,), jnp.float32)
        g2 = jnp.ones((C,), jnp.float32)
        be2 = jnp.zeros((C,), jnp.float32)
        vecc_l.append(jnp.stack([b_embed, b1, g1, be1, b9, g2, be2], axis=0))   # (7, C)
        vecm_l.append(jnp.stack([bcls, bmap], axis=0))                           # (2, cmap)

    return {
        # bf16 matmul weights (halves weight DMA, doubles MXU rate); f32 accumulation in-kernel.
        'w_emb': jnp.stack(wemb_l).astype(jnp.bfloat16),   # (5, p_in, C)
        'w1':    jnp.stack(w1_l).astype(jnp.bfloat16),     # (5, C, C)
        'w9':    jnp.stack(w9_l).astype(jnp.bfloat16),     # (5, 9C, C)
        'wcls':  jnp.stack(wcls_l).astype(jnp.bfloat16),   # (5, C, cmap)
        'wmap':  jnp.stack(wmap_l),                        # (5, c_dim, cmap) f32 (tiny)
        'vecc':  jnp.stack(vecc_l),                        # (5, 7, C) f32
        'vecm':  jnp.stack(vecm_l),                        # (5, 2, cmap) f32
    }


# ------------------------- forward (ProjectedDiscriminator) --------------
def projected_discriminator_forward(x, c, params):
    """x: (B, 3, H, W) NCHW in [-1, 1]; c: (B, c_dim) -> logits (B, n_hooks * L)."""
    assert x.shape[0] <= VIRTUAL_BS  # single BatchNormLocal virtual-batch group (G == 1)
    # TODO(synk): DiffAugment('color,translation,cutout') and the p_crop RandomCrop are
    # stochastic data augmentations (np.random / torch rand); omitted deterministically.
    # TODO(synk): the frozen pretrained DINO ViT backbone (make_vit_backbone / forward_vit)
    # is replaced by a deterministic patch-embedding stand-in of identical feature shapes.
    bsz = x.shape[0]
    g = IMG_RES // PATCH
    patches = x.reshape(bsz, 3, g, PATCH, g, PATCH)
    patches = jnp.transpose(patches, (0, 2, 4, 1, 3, 5)).reshape(bsz * L, P_IN)
    out = fused_forward(patches, c, params)          # (n_hooks, B, L_PAD)
    out = out[:, :, :L]                              # drop lane padding
    # head-major concat (matches torch.cat over heads along dim=1)
    return jnp.transpose(out, (1, 0, 2)).reshape(bsz, N_HOOKS * L)


if __name__ == "__main__":
    key = jax.random.PRNGKey(0)
    kx, kc, kp = jax.random.split(key, 3)
    x = jax.random.uniform(kx, (B, 3, IMG_RES, IMG_RES), jnp.float32, -1.0, 1.0)
    c = jax.random.normal(kc, (B, C_DIM), jnp.float32)
    params = init_params(kp)

    logits = jax.jit(projected_discriminator_forward)(x, c, params)
    logits = jax.block_until_ready(logits)
    assert logits.shape == (B, N_HOOKS * L), logits.shape
    assert bool(jnp.all(jnp.isfinite(logits)))
    print("KERNEL_OK")
</pallas_src>

<mosaic_0001>
module attributes {stable_mosaic.version = 11 : i64} {
  func.func @_disc_head_kernel(%arg0: i32, %arg1: memref<32x48xf32, #tpu.memory_space<vmem>>, %arg2: memref<2x8xf32, #tpu.memory_space<vmem>>, %arg3: memref<1x48x32xbf16, #tpu.memory_space<vmem>>, %arg4: memref<1x32x32xbf16, #tpu.memory_space<vmem>>, %arg5: memref<1x288x32xbf16, #tpu.memory_space<vmem>>, %arg6: memref<1x32x64xbf16, #tpu.memory_space<vmem>>, %arg7: memref<1x8x64xf32, #tpu.memory_space<vmem>>, %arg8: memref<1x7x32xf32, #tpu.memory_space<vmem>>, %arg9: memref<1x2x64xf32, #tpu.memory_space<vmem>>, %arg10: memref<1x2x128xf32, #tpu.memory_space<vmem>>) attributes {dimension_semantics = [#tpu.dimension_semantics<parallel>], iteration_bounds = array<i64: 5>, scalar_prefetch = 0 : i64, scratch_operands = 0 : i64, tpu.core_type = #tpu.core_type<tc>, window_params = [{pipeline_mode = #tpu.pipeline_mode<synchronous>, transform_indices = @transform_0, window_bounds = array<i64: 32, 48>}, {pipeline_mode = #tpu.pipeline_mode<synchronous>, transform_indices = @transform_1, window_bounds = array<i64: 2, 8>}, {transform_indices = @transform_2, window_bounds = array<i64: 1, 48, 32>}, {transform_indices = @transform_3, window_bounds = array<i64: 1, 32, 32>}, {transform_indices = @transform_4, window_bounds = array<i64: 1, 288, 32>}, {transform_indices = @transform_5, window_bounds = array<i64: 1, 32, 64>}, {transform_indices = @transform_6, window_bounds = array<i64: 1, 8, 64>}, {transform_indices = @transform_7, window_bounds = array<i64: 1, 7, 32>}, {transform_indices = @transform_8, window_bounds = array<i64: 1, 2, 64>}, {transform_indices = @transform_9, window_bounds = array<i64: 1, 2, 128>}]} {
    %c0 = arith.constant 0 : index
    %c0_0 = arith.constant 0 : index
    %0 = vector.load %arg1[%c0, %c0_0] : memref<32x48xf32, #tpu.memory_space<vmem>>, vector<32x48xf32>
    %1 = arith.truncf %0 : vector<32x48xf32> to vector<32x48xbf16>
    %c0_1 = arith.constant 0 : index
    %c0_2 = arith.constant 0 : index
    %c0_3 = arith.constant 0 : index
    %2 = vector.load %arg3[%c0_1, %c0_2, %c0_3] : memref<1x48x32xbf16, #tpu.memory_space<vmem>>, vector<1x48x32xbf16>
    %3 = vector.shape_cast %2 : vector<1x48x32xbf16> to vector<48x32xbf16>
    %cst = arith.constant dense<0.000000e+00> : vector<32x32xf32>
    %4 = tpu.matmul %1, %3, %cst {dimension_numbers = #tpu.dot_dimension_numbers<[1], [0], [0], [1], [0, 0, 1, 1], [], []>} : vector<32x48xbf16>, vector<48x32xbf16>, vector<32x32xf32> -> vector<32x32xf32>
    %c0_4 = arith.constant 0 : index
    %c0_5 = arith.constant 0 : index
    %c0_6 = arith.constant 0 : index
    %5 = vector.load %arg8[%c0_4, %c0_5, %c0_6] : memref<1x7x32xf32, #tpu.memory_space<vmem>>, vector<1x1x32xf32>
    %6 = vector.shape_cast %5 : vector<1x1x32xf32> to vector<1x32xf32>
    %7 = vector.broadcast %6 : vector<1x32xf32> to vector<32x32xf32>
    %8 = arith.addf %4, %7 : vector<32x32xf32>
    %9 = arith.truncf %8 : vector<32x32xf32> to vector<32x32xbf16>
    %c0_7 = arith.constant 0 : index
    %c0_8 = arith.constant 0 : index
    %c0_9 = arith.constant 0 : index
    %10 = vector.load %arg4[%c0_7, %c0_8, %c0_9] : memref<1x32x32xbf16, #tpu.memory_space<vmem>>, vector<1x32x32xbf16>
    %11 = vector.shape_cast %10 : vector<1x32x32xbf16> to vector<32x32xbf16>
    %cst_10 = arith.constant dense<0.000000e+00> : vector<32x32xf32>
    %12 = tpu.matmul %9, %11, %cst_10 {dimension_numbers = #tpu.dot_dimension_numbers<[1], [0], [0], [1], [0, 0, 1, 1], [], []>} : vector<32x32xbf16>, vector<32x32xbf16>, vector<32x32xf32> -> vector<32x32xf32>
    %c0_11 = arith.constant 0 : index
    %c1 = arith.constant 1 : index
    %c0_12 = arith.constant 0 : index
    %13 = vector.load %arg8[%c0_11, %c1, %c0_12] : memref<1x7x32xf32, #tpu.memory_space<vmem>>, vector<1x1x32xf32>
    %14 = vector.shape_cast %13 : vector<1x1x32xf32> to vector<1x32xf32>
    %15 = vector.broadcast %14 : vector<1x32xf32> to vector<32x32xf32>
    %16 = arith.addf %12, %15 : vector<32x32xf32>
    %cst_13 = arith.constant dense<0.000000e+00> : vector<32xf32>
    %17 = vector.multi_reduction <add>, %16, %cst_13 [0] : vector<32x32xf32> to vector<32xf32>
    %18 = vector.shape_cast %17 : vector<32xf32> to vector<1x32xf32>
    %cst_14 = arith.constant 3.200000e+01 : f32
    %19 = vector.broadcast %cst_14 : f32 to vector<1x32xf32>
    %20 = arith.divf %18, %19 : vector<1x32xf32>
    %21 = vector.broadcast %20 : vector<1x32xf32> to vector<32x32xf32>
    %22 = arith.subf %16, %21 : vector<32x32xf32>
    %23 = arith.mulf %22, %22 : vector<32x32xf32>
    %cst_15 = arith.constant dense<0.000000e+00> : vector<32xf32>
    %24 = vector.multi_reduction <add>, %23, %cst_15 [0] : vector<32x32xf32> to vector<32xf32>
    %25 = vector.shape_cast %24 : vector<32xf32> to vector<1x32xf32>
    %cst_16 = arith.constant 3.200000e+01 : f32
    %26 = vector.broadcast %cst_16 : f32 to vector<1x32xf32>
    %27 = arith.divf %25, %26 : vector<1x32xf32>
    %c0_17 = arith.constant 0 : index
    %c2 = arith.constant 2 : index
    %c0_18 = arith.constant 0 : index
    %28 = vector.load %arg8[%c0_17, %c2, %c0_18] : memref<1x7x32xf32, #tpu.memory_space<vmem>>, vector<1x1x32xf32>
    %29 = vector.shape_cast %28 : vector<1x1x32xf32> to vector<1x32xf32>
    %cst_19 = arith.constant 9.99999974E-6 : f32
    %30 = vector.broadcast %cst_19 : f32 to vector<1x32xf32>
    %31 = arith.addf %27, %30 : vector<1x32xf32>
    %32 = math.rsqrt %31 : vector<1x32xf32>
    %33 = arith.mulf %29, %32 : vector<1x32xf32>
    %34 = vector.broadcast %33 : vector<1x32xf32> to vector<32x32xf32>
    %35 = arith.mulf %22, %34 : vector<32x32xf32>
    %c0_20 = arith.constant 0 : index
    %c3 = arith.constant 3 : index
    %c0_21 = arith.constant 0 : index
    %36 = vector.load %arg8[%c0_20, %c3, %c0_21] : memref<1x7x32xf32, #tpu.memory_space<vmem>>, vector<1x1x32xf32>
    %37 = vector.shape_cast %36 : vector<1x1x32xf32> to vector<1x32xf32>
    %38 = vector.broadcast %37 : vector<1x32xf32> to vector<32x32xf32>
    %39 = arith.addf %35, %38 : vector<32x32xf32>
    %cst_22 = arith.constant 0.000000e+00 : f32
    %40 = vector.broadcast %cst_22 : f32 to vector<32x32xf32>
    %41 = arith.cmpf ogt, %39, %40 : vector<32x32xf32>
    %cst_23 = arith.constant 2.000000e-01 : f32
    %42 = vector.broadcast %cst_23 : f32 to vector<32x32xf32>
    %43 = arith.mulf %42, %39 : vector<32x32xf32>
    %44 = arith.select %41, %39, %43 : vector<32x32xi1>, vector<32x32xf32>
    %45 = vector.shape_cast %44 : vector<32x32xf32> to vector<2x16x32xf32>
    %cst_24 = arith.constant 0.000000e+00 : f32
    %46 = vector.broadcast %cst_24 : f32 to vector<32x32xf32>
    %47 = vector.extract_strided_slice %45 {offsets = [0, 12, 0], sizes = [2, 4, 32], strides = [1, 1, 1]} : vector<2x16x32xf32> to vector<2x4x32xf32>
    %48 = vector.extract_strided_slice %45 {offsets = [0, 0, 0], sizes = [2, 12, 32], strides = [1, 1, 1]} : vector<2x16x32xf32> to vector<2x12x32xf32>
    %49 = tpu.concatenate %47, %48 in 1 : vector<2x4x32xf32>, vector<2x12x32xf32> -> vector<2x16x32xf32>
    %50 = vector.shape_cast %49 : vector<2x16x32xf32> to vector<32x32xf32>
    %51 = arith.truncf %50 : vector<32x32xf32> to vector<32x32xbf16>
    %c0_25 = arith.constant 0 : index
    %c0_26 = arith.constant 0 : index
    %c0_27 = arith.constant 0 : index
    %52 = vector.load %arg5[%c0_25, %c0_26, %c0_27] : memref<1x288x32xbf16, #tpu.memory_space<vmem>>, vector<1x32x32xbf16>
    %53 = vector.shape_cast %52 : vector<1x32x32xbf16> to vector<32x32xbf16>
    %cst_28 = arith.constant dense<0.000000e+00> : vector<32x32xf32>
    %54 = tpu.matmul %51, %53, %cst_28 {dimension_numbers = #tpu.dot_dimension_numbers<[1], [0], [0], [1], [0, 0, 1, 1], [], []>} : vector<32x32xbf16>, vector<32x32xbf16>, vector<32x32xf32> -> vector<32x32xf32>
    %55 = arith.addf %46, %54 : vector<32x32xf32>
    %56 = vector.extract_strided_slice %45 {offsets = [0, 13, 0], sizes = [2, 3, 32], strides = [1, 1, 1]} : vector<2x16x32xf32> to vector<2x3x32xf32>
    %57 = vector.extract_strided_slice %45 {offsets = [0, 0, 0], sizes = [2, 13, 32], strides = [1, 1, 1]} : vector<2x16x32xf32> to vector<2x13x32xf32>
    %58 = tpu.concatenate %56, %57 in 1 : vector<2x3x32xf32>, vector<2x13x32xf32> -> vector<2x16x32xf32>
    %59 = vector.shape_cast %58 : vector<2x16x32xf32> to vector<32x32xf32>
    %60 = arith.truncf %59 : vector<32x32xf32> to vector<32x32xbf16>
    %c0_29 = arith.constant 0 : index
    %c32 = arith.constant 32 : index
    %c0_30 = arith.constant 0 : index
    %61 = vector.load %arg5[%c0_29, %c32, %c0_30] : memref<1x288x32xbf16, #tpu.memory_space<vmem>>, vector<1x32x32xbf16>
    %62 = vector.shape_cast %61 : vector<1x32x32xbf16> to vector<32x32xbf16>
    %cst_31 = arith.constant dense<0.000000e+00> : vector<32x32xf32>
    %63 = tpu.matmul %60, %62, %cst_31 {dimension_numbers = #tpu.dot_dimension_numbers<[1], [0], [0], [1], [0, 0, 1, 1], [], []>} : vector<32x32xbf16>, vector<32x32xbf16>, vector<32x32xf32> -> vector<32x32xf32>
    %64 = arith.addf %55, %63 : vector<32x32xf32>
    %65 = vector.extract_strided_slice %45 {offsets = [0, 14, 0], sizes = [2, 2, 32], strides = [1, 1, 1]} : vector<2x16x32xf32> to vector<2x2x32xf32>
    %66 = vector.extract_strided_slice %45 {offsets = [0, 0, 0], sizes = [2, 14, 32], strides = [1, 1, 1]} : vector<2x16x32xf32> to vector<2x14x32xf32>
    %67 = tpu.concatenate %65, %66 in 1 : vector<2x2x32xf32>, vector<2x14x32xf32> -> vector<2x16x32xf32>
    %68 = vector.shape_cast %67 : vector<2x16x32xf32> to vector<32x32xf32>
    %69 = arith.truncf %68 : vector<32x32xf32> to vector<32x32xbf16>
    %c0_32 = arith.constant 0 : index
    %c64 = arith.constant 64 : index
    %c0_33 = arith.constant 0 : index
    %70 = vector.load %arg5[%c0_32, %c64, %c0_33] : memref<1x288x32xbf16, #tpu.memory_space<vmem>>, vector<1x32x32xbf16>
    %71 = vector.shape_cast %70 : vector<1x32x32xbf16> to vector<32x32xbf16>
    %cst_34 = arith.constant dense<0.000000e+00> : vector<32x32xf32>
    %72 = tpu.matmul %69, %71, %cst_34 {dimension_numbers = #tpu.dot_dimension_numbers<[1], [0], [0], [1], [0, 0, 1, 1], [], []>} : vector<32x32xbf16>, vector<32x32xbf16>, vector<32x32xf32> -> vector<32x32xf32>
    %73 = arith.addf %64, %72 : vector<32x32xf32>
    %74 = vector.extract_strided_slice %45 {offsets = [0, 15, 0], sizes = [2, 1, 32], strides = [1, 1, 1]} : vector<2x16x32xf32> to vector<2x1x32xf32>
    %75 = vector.extract_strided_slice %45 {offsets = [0, 0, 0], sizes = [2, 15, 32], strides = [1, 1, 1]} : vector<2x16x32xf32> to vector<2x15x32xf32>
    %76 = tpu.concatenate %74, %75 in 1 : vector<2x1x32xf32>, vector<2x15x32xf32> -> vector<2x16x32xf32>
    %77 = vector.shape_cast %76 : vector<2x16x32xf32> to vector<32x32xf32>
    %78 = arith.truncf %77 : vector<32x32xf32> to vector<32x32xbf16>
    %c0_35 = arith.constant 0 : index
    %c96 = arith.constant 96 : index
    %c0_36 = arith.constant 0 : index
    %79 = vector.load %arg5[%c0_35, %c96, %c0_36] : memref<1x288x32xbf16, #tpu.memory_space<vmem>>, vector<1x32x32xbf16>
    %80 = vector.shape_cast %79 : vector<1x32x32xbf16> to vector<32x32xbf16>
    %cst_37 = arith.constant dense<0.000000e+00> : vector<32x32xf32>
    %81 = tpu.matmul %78, %80, %cst_37 {dimension_numbers = #tpu.dot_dimension_numbers<[1], [0], [0], [1], [0, 0, 1, 1], [], []>} : vector<32x32xbf16>, vector<32x32xbf16>, vector<32x32xf32> -> vector<32x32xf32>
    %82 = arith.addf %73, %81 : vector<32x32xf32>
    %83 = vector.shape_cast %45 : vector<2x16x32xf32> to vector<32x32xf32>
    %84 = arith.truncf %83 : vector<32x32xf32> to vector<32x32xbf16>
    %c0_38 = arith.constant 0 : index
    %c128 = arith.constant 128 : index
    %c0_39 = arith.constant 0 : index
    %85 = vector.load %arg5[%c0_38, %c128, %c0_39] : memref<1x288x32xbf16, #tpu.memory_space<vmem>>, vector<1x32x32xbf16>
    %86 = vector.shape_cast %85 : vector<1x32x32xbf16> to vector<32x32xbf16>
    %cst_40 = arith.constant dense<0.000000e+00> : vector<32x32xf32>
    %87 = tpu.matmul %84, %86, %cst_40 {dimension_numbers = #tpu.dot_dimension_numbers<[1], [0], [0], [1], [0, 0, 1, 1], [], []>} : vector<32x32xbf16>, vector<32x32xbf16>, vector<32x32xf32> -> vector<32x32xf32>
    %88 = arith.addf %82, %87 : vector<32x32xf32>
    %89 = vector.extract_strided_slice %45 {offsets = [0, 1, 0], sizes = [2, 15, 32], strides = [1, 1, 1]} : vector<2x16x32xf32> to vector<2x15x32xf32>
    %90 = vector.extract_strided_slice %45 {offsets = [0, 0, 0], sizes = [2, 1, 32], strides = [1, 1, 1]} : vector<2x16x32xf32> to vector<2x1x32xf32>
    %91 = tpu.concatenate %89, %90 in 1 : vector<2x15x32xf32>, vector<2x1x32xf32> -> vector<2x16x32xf32>
    %92 = vector.shape_cast %91 : vector<2x16x32xf32> to vector<32x32xf32>
    %93 = arith.truncf %92 : vector<32x32xf32> to vector<32x32xbf16>
    %c0_41 = arith.constant 0 : index
    %c160 = arith.constant 160 : index
    %c0_42 = arith.constant 0 : index
    %94 = vector.load %arg5[%c0_41, %c160, %c0_42] : memref<1x288x32xbf16, #tpu.memory_space<vmem>>, vector<1x32x32xbf16>
    %95 = vector.shape_cast %94 : vector<1x32x32xbf16> to vector<32x32xbf16>
    %cst_43 = arith.constant dense<0.000000e+00> : vector<32x32xf32>
    %96 = tpu.matmul %93, %95, %cst_43 {dimension_numbers = #tpu.dot_dimension_numbers<[1], [0], [0], [1], [0, 0, 1, 1], [], []>} : vector<32x32xbf16>, vector<32x32xbf16>, vector<32x32xf32> -> vector<32x32xf32>
    %97 = arith.addf %88, %96 : vector<32x32xf32>
    %98 = vector.extract_strided_slice %45 {offsets = [0, 2, 0], sizes = [2, 14, 32], strides = [1, 1, 1]} : vector<2x16x32xf32> to vector<2x14x32xf32>
    %99 = vector.extract_strided_slice %45 {offsets = [0, 0, 0], sizes = [2, 2, 32], strides = [1, 1, 1]} : vector<2x16x32xf32> to vector<2x2x32xf32>
    %100 = tpu.concatenate %98, %99 in 1 : vector<2x14x32xf32>, vector<2x2x32xf32> -> vector<2x16x32xf32>
    %101 = vector.shape_cast %100 : vector<2x16x32xf32> to vector<32x32xf32>
    %102 = arith.truncf %101 : vector<32x32xf32> to vector<32x32xbf16>
    %c0_44 = arith.constant 0 : index
    %c192 = arith.constant 192 : index
    %c0_45 = arith.constant 0 : index
    %103 = vector.load %arg5[%c0_44, %c192, %c0_45] : memref<1x288x32xbf16, #tpu.memory_space<vmem>>, vector<1x32x32xbf16>
    %104 = vector.shape_cast %103 : vector<1x32x32xbf16> to vector<32x32xbf16>
    %cst_46 = arith.constant dense<0.000000e+00> : vector<32x32xf32>
    %105 = tpu.matmul %102, %104, %cst_46 {dimension_numbers = #tpu.dot_dimension_numbers<[1], [0], [0], [1], [0, 0, 1, 1], [], []>} : vector<32x32xbf16>, vector<32x32xbf16>, vector<32x32xf32> -> vector<32x32xf32>
    %106 = arith.addf %97, %105 : vector<32x32xf32>
    %107 = vector.extract_strided_slice %45 {offsets = [0, 3, 0], sizes = [2, 13, 32], strides = [1, 1, 1]} : vector<2x16x32xf32> to vector<2x13x32xf32>
    %108 = vector.extract_strided_slice %45 {offsets = [0, 0, 0], sizes = [2, 3, 32], strides = [1, 1, 1]} : vector<2x16x32xf32> to vector<2x3x32xf32>
    %109 = tpu.concatenate %107, %108 in 1 : vector<2x13x32xf32>, vector<2x3x32xf32> -> vector<2x16x32xf32>
    %110 = vector.shape_cast %109 : vector<2x16x32xf32> to vector<32x32xf32>
    %111 = arith.truncf %110 : vector<32x32xf32> to vector<32x32xbf16>
    %c0_47 = arith.constant 0 : index
    %c224 = arith.constant 224 : index
    %c0_48 = arith.constant 0 : index
    %112 = vector.load %arg5[%c0_47, %c224, %c0_48] : memref<1x288x32xbf16, #tpu.memory_space<vmem>>, vector<1x32x32xbf16>
    %113 = vector.shape_cast %112 : vector<1x32x32xbf16> to vector<32x32xbf16>
    %cst_49 = arith.constant dense<0.000000e+00> : vector<32x32xf32>
    %114 = tpu.matmul %111, %113, %cst_49 {dimension_numbers = #tpu.dot_dimension_numbers<[1], [0], [0], [1], [0, 0, 1, 1], [], []>} : vector<32x32xbf16>, vector<32x32xbf16>, vector<32x32xf32> -> vector<32x32xf32>
    %115 = arith.addf %106, %114 : vector<32x32xf32>
    %116 = vector.extract_strided_slice %45 {offsets = [0, 4, 0], sizes = [2, 12, 32], strides = [1, 1, 1]} : vector<2x16x32xf32> to vector<2x12x32xf32>
    %117 = vector.extract_strided_slice %45 {offsets = [0, 0, 0], sizes = [2, 4, 32], strides = [1, 1, 1]} : vector<2x16x32xf32> to vector<2x4x32xf32>
    %118 = tpu.concatenate %116, %117 in 1 : vector<2x12x32xf32>, vector<2x4x32xf32> -> vector<2x16x32xf32>
    %119 = vector.shape_cast %118 : vector<2x16x32xf32> to vector<32x32xf32>
    %120 = arith.truncf %119 : vector<32x32xf32> to vector<32x32xbf16>
    %c0_50 = arith.constant 0 : index
    %c256 = arith.constant 256 : index
    %c0_51 = arith.constant 0 : index
    %121 = vector.load %arg5[%c0_50, %c256, %c0_51] : memref<1x288x32xbf16, #tpu.memory_space<vmem>>, vector<1x32x32xbf16>
    %122 = vector.shape_cast %121 : vector<1x32x32xbf16> to vector<32x32xbf16>
    %cst_52 = arith.constant dense<0.000000e+00> : vector<32x32xf32>
    %123 = tpu.matmul %120, %122, %cst_52 {dimension_numbers = #tpu.dot_dimension_numbers<[1], [0], [0], [1], [0, 0, 1, 1], [], []>} : vector<32x32xbf16>, vector<32x32xbf16>, vector<32x32xf32> -> vector<32x32xf32>
    %124 = arith.addf %115, %123 : vector<32x32xf32>
    %c0_53 = arith.constant 0 : index
    %c4 = arith.constant 4 : index
    %c0_54 = arith.constant 0 : index
    %125 = vector.load %arg8[%c0_53, %c4, %c0_54] : memref<1x7x32xf32, #tpu.memory_space<vmem>>, vector<1x1x32xf32>
    %126 = vector.shape_cast %125 : vector<1x1x32xf32> to vector<1x32xf32>
    %127 = vector.broadcast %126 : vector<1x32xf32> to vector<32x32xf32>
    %128 = arith.addf %124, %127 : vector<32x32xf32>
    %cst_55 = arith.constant dense<0.000000e+00> : vector<32xf32>
    %129 = vector.multi_reduction <add>, %128, %cst_55 [0] : vector<32x32xf32> to vector<32xf32>
    %130 = vector.shape_cast %129 : vector<32xf32> to vector<1x32xf32>
    %cst_56 = arith.constant 3.200000e+01 : f32
    %131 = vector.broadcast %cst_56 : f32 to vector<1x32xf32>
    %132 = arith.divf %130, %131 : vector<1x32xf32>
    %133 = vector.broadcast %132 : vector<1x32xf32> to vector<32x32xf32>
    %134 = arith.subf %128, %133 : vector<32x32xf32>
    %135 = arith.mulf %134, %134 : vector<32x32xf32>
    %cst_57 = arith.constant dense<0.000000e+00> : vector<32xf32>
    %136 = vector.multi_reduction <add>, %135, %cst_57 [0] : vector<32x32xf32> to vector<32xf32>
    %137 = vector.shape_cast %136 : vector<32xf32> to vector<1x32xf32>
    %cst_58 = arith.constant 3.200000e+01 : f32
    %138 = vector.broadcast %cst_58 : f32 to vector<1x32xf32>
    %139 = arith.divf %137, %138 : vector<1x32xf32>
    %c0_59 = arith.constant 0 : index
    %c5 = arith.constant 5 : index
    %c0_60 = arith.constant 0 : index
    %140 = vector.load %arg8[%c0_59, %c5, %c0_60] : memref<1x7x32xf32, #tpu.memory_space<vmem>>, vector<1x1x32xf32>
    %141 = vector.shape_cast %140 : vector<1x1x32xf32> to vector<1x32xf32>
    %cst_61 = arith.constant 9.99999974E-6 : f32
    %142 = vector.broadcast %cst_61 : f32 to vector<1x32xf32>
    %143 = arith.addf %139, %142 : vector<1x32xf32>
    %144 = math.rsqrt %143 : vector<1x32xf32>
    %145 = arith.mulf %141, %144 : vector<1x32xf32>
    %146 = vector.broadcast %145 : vector<1x32xf32> to vector<32x32xf32>
    %147 = arith.mulf %134, %146 : vector<32x32xf32>
    %c0_62 = arith.constant 0 : index
    %c6 = arith.constant 6 : index
    %c0_63 = arith.constant 0 : index
    %148 = vector.load %arg8[%c0_62, %c6, %c0_63] : memref<1x7x32xf32, #tpu.memory_space<vmem>>, vector<1x1x32xf32>
    %149 = vector.shape_cast %148 : vector<1x1x32xf32> to vector<1x32xf32>
    %150 = vector.broadcast %149 : vector<1x32xf32> to vector<32x32xf32>
    %151 = arith.addf %147, %150 : vector<32x32xf32>
    %cst_64 = arith.constant 0.000000e+00 : f32
    %152 = vector.broadcast %cst_64 : f32 to vector<32x32xf32>
    %153 = arith.cmpf ogt, %151, %152 : vector<32x32xf32>
    %cst_65 = arith.constant 2.000000e-01 : f32
    %154 = vector.broadcast %cst_65 : f32 to vector<32x32xf32>
    %155 = arith.mulf %154, %151 : vector<32x32xf32>
    %156 = arith.select %153, %151, %155 : vector<32x32xi1>, vector<32x32xf32>
    %157 = arith.addf %156, %44 : vector<32x32xf32>
    %158 = arith.truncf %157 : vector<32x32xf32> to vector<32x32xbf16>
    %c0_66 = arith.constant 0 : index
    %c0_67 = arith.constant 0 : index
    %c0_68 = arith.constant 0 : index
    %159 = vector.load %arg6[%c0_66, %c0_67, %c0_68] : memref<1x32x64xbf16, #tpu.memory_space<vmem>>, vector<1x32x64xbf16>
    %160 = vector.shape_cast %159 : vector<1x32x64xbf16> to vector<32x64xbf16>
    %cst_69 = arith.constant dense<0.000000e+00> : vector<32x64xf32>
    %161 = tpu.matmul %158, %160, %cst_69 {dimension_numbers = #tpu.dot_dimension_numbers<[1], [0], [0], [1], [0, 0, 1, 1], [], []>} : vector<32x32xbf16>, vector<32x64xbf16>, vector<32x64xf32> -> vector<32x64xf32>
    %c0_70 = arith.constant 0 : index
    %c0_71 = arith.constant 0 : index
    %c0_72 = arith.constant 0 : index
    %162 = vector.load %arg9[%c0_70, %c0_71, %c0_72] : memref<1x2x64xf32, #tpu.memory_space<vmem>>, vector<1x1x64xf32>
    %163 = vector.shape_cast %162 : vector<1x1x64xf32> to vector<1x64xf32>
    %164 = vector.broadcast %163 : vector<1x64xf32> to vector<32x64xf32>
    %165 = arith.addf %161, %164 : vector<32x64xf32>
    %c0_73 = arith.constant 0 : index
    %c0_74 = arith.constant 0 : index
    %166 = vector.load %arg2[%c0_73, %c0_74] : memref<2x8xf32, #tpu.memory_space<vmem>>, vector<2x8xf32>
    %c0_75 = arith.constant 0 : index
    %c0_76 = arith.constant 0 : index
    %c0_77 = arith.constant 0 : index
    %167 = vector.load %arg7[%c0_75, %c0_76, %c0_77] : memref<1x8x64xf32, #tpu.memory_space<vmem>>, vector<1x8x64xf32>
    %168 = vector.shape_cast %167 : vector<1x8x64xf32> to vector<8x64xf32>
    %cst_78 = arith.constant dense<0.000000e+00> : vector<2x64xf32>
    %169 = tpu.matmul %166, %168, %cst_78 {dimension_numbers = #tpu.dot_dimension_numbers<[1], [0], [0], [1], [0, 0, 1, 1], [], []>} : vector<2x8xf32>, vector<8x64xf32>, vector<2x64xf32> -> vector<2x64xf32>
    %c0_79 = arith.constant 0 : index
    %c1_80 = arith.constant 1 : index
    %c0_81 = arith.constant 0 : index
    %170 = vector.load %arg9[%c0_79, %c1_80, %c0_81] : memref<1x2x64xf32, #tpu.memory_space<vmem>>, vector<1x1x64xf32>
    %171 = vector.shape_cast %170 : vector<1x1x64xf32> to vector<1x64xf32>
    %172 = vector.broadcast %171 : vector<1x64xf32> to vector<2x64xf32>
    %173 = arith.addf %169, %172 : vector<2x64xf32>
    %174 = vector.shape_cast %165 : vector<32x64xf32> to vector<2x16x64xf32>
    %175 = vector.shape_cast %173 : vector<2x64xf32> to vector<2x1x64xf32>
    %176 = vector.broadcast %175 : vector<2x1x64xf32> to vector<2x16x64xf32>
    %177 = arith.mulf %174, %176 : vector<2x16x64xf32>
    %cst_82 = arith.constant dense<0.000000e+00> : vector<2x16xf32>
    %178 = vector.multi_reduction <add>, %177, %cst_82 [2] : vector<2x16x64xf32> to vector<2x16xf32>
    %cst_83 = arith.constant 0.000000e+00 : f32
    %179 = vector.broadcast %cst_83 : f32 to vector<2x112xf32>
    %180 = tpu.concatenate %178, %179 in 1 : vector<2x16xf32>, vector<2x112xf32> -> vector<2x128xf32>
    %c0_84 = arith.constant 0 : index
    %c0_85 = arith.constant 0 : index
    %c0_86 = arith.constant 0 : index
    %181 = vector.load %arg10[%c0_84, %c0_85, %c0_86] : memref<1x2x128xf32, #tpu.memory_space<vmem>>, vector<1x2x128xf32>
    %182 = vector.shape_cast %181 : vector<1x2x128xf32> to vector<2x128xf32>
    %183 = vector.shape_cast %180 : vector<2x128xf32> to vector<1x2x128xf32>
    tpu.vector_store %arg10[%c0_84, %c0_85, %c0_86], %183 {strides = array<i32>} : memref<1x2x128xf32, #tpu.memory_space<vmem>>, vector<1x2x128xf32>,
    return
  }
  func.func @transform_0(%arg0: i32) -> (i32, i32) {
    %c0_i32 = arith.constant 0 : i32
    %c0_i32_0 = arith.constant 0 : i32
    %c0_i32_1 = arith.constant 0 : i32
    return %c0_i32, %c0_i32_0 : i32, i32
  }
  func.func @transform_1(%arg0: i32) -> (i32, i32) {
    %c0_i32 = arith.constant 0 : i32
    %c0_i32_0 = arith.constant 0 : i32
    %c0_i32_1 = arith.constant 0 : i32
    return %c0_i32, %c0_i32_0 : i32, i32
  }
  func.func @transform_2(%arg0: i32) -> (i32, i32, i32) {
    %c0_i32 = arith.constant 0 : i32
    %c0_i32_0 = arith.constant 0 : i32
    %c0_i32_1 = arith.constant 0 : i32
    return %arg0, %c0_i32, %c0_i32_0 : i32, i32, i32
  }
  func.func @transform_3(%arg0: i32) -> (i32, i32, i32) {
    %c0_i32 = arith.constant 0 : i32
    %c0_i32_0 = arith.constant 0 : i32
    %c0_i32_1 = arith.constant 0 : i32
    return %arg0, %c0_i32, %c0_i32_0 : i32, i32, i32
  }
  func.func @transform_4(%arg0: i32) -> (i32, i32, i32) {
    %c0_i32 = arith.constant 0 : i32
    %c0_i32_0 = arith.constant 0 : i32
    %c0_i32_1 = arith.constant 0 : i32
    return %arg0, %c0_i32, %c0_i32_0 : i32, i32, i32
  }
  func.func @transform_5(%arg0: i32) -> (i32, i32, i32) {
    %c0_i32 = arith.constant 0 : i32
    %c0_i32_0 = arith.constant 0 : i32
    %c0_i32_1 = arith.constant 0 : i32
    return %arg0, %c0_i32, %c0_i32_0 : i32, i32, i32
  }
  func.func @transform_6(%arg0: i32) -> (i32, i32, i32) {
    %c0_i32 = arith.constant 0 : i32
    %c0_i32_0 = arith.constant 0 : i32
    %c0_i32_1 = arith.constant 0 : i32
    return %arg0, %c0_i32, %c0_i32_0 : i32, i32, i32
  }
  func.func @transform_7(%arg0: i32) -> (i32, i32, i32) {
    %c0_i32 = arith.constant 0 : i32
    %c0_i32_0 = arith.constant 0 : i32
    %c0_i32_1 = arith.constant 0 : i32
    return %arg0, %c0_i32, %c0_i32_0 : i32, i32, i32
  }
  func.func @transform_8(%arg0: i32) -> (i32, i32, i32) {
    %c0_i32 = arith.constant 0 : i32
    %c0_i32_0 = arith.constant 0 : i32
    %c0_i32_1 = arith.constant 0 : i32
    return %arg0, %c0_i32, %c0_i32_0 : i32, i32, i32
  }
  func.func @transform_9(%arg0: i32) -> (i32, i32, i32) {
    %c0_i32 = arith.constant 0 : i32
    %c0_i32_0 = arith.constant 0 : i32
    %c0_i32_1 = arith.constant 0 : i32
    return %arg0, %c0_i32, %c0_i32_0 : i32, i32, i32
  }
}

</mosaic_0001>

<bundles_post_ra>
// kernel: projected_discriminator_forward.1
= control target key start
LH: loop header
LB: loop body
LE: loop exit
PB: predicated region body
PF: predicated region fallthrough
CT: control target
= control target key end

     0   :  { %s2258_s30 = smov 0   ;;  %s2510_s0 = inlined_call_operand.vmem [shape: f32[32,48], index: 0, kind: input, shape index: {}]   ;;  %s2511_s1 = inlined_call_operand.vmem [shape: f32[2,8], index: 1, kind: input, shape index: {}]   ;;  %s2512_s2 = inlined_call_operand.vmem [shape: bf16[5,48,32], index: 2, kind: input, shape index: {}]   ;;  %s2513_s3 = inlined_call_operand.vmem [shape: bf16[5,32,32], index: 3, kind: input, shape index: {}]   ;;  %s2514_s4 = inlined_call_operand.vmem [shape: bf16[5,288,32], index: 4, kind: input, shape index: {}]   ;;  %s2515_s5 = inlined_call_operand.vmem [shape: bf16[5,32,64], index: 5, kind: input, shape index: {}]   ;;  %s2516_s6 = inlined_call_operand.vmem [shape: f32[5,8,64], index: 6, kind: input, shape index: {}]   ;;  %s2517_s7 = inlined_call_operand.vmem [shape: f32[5,7,32], index: 7, kind: input, shape index: {}]   ;;  %s2518_s8 = inlined_call_operand.vmem [shape: f32[5,2,64], index: 8, kind: input, shape index: {}]   ;;  %s2519_s9 = inlined_call_operand.vmem [shape: f32[5,2,128], index: 9, kind: output, shape index: {}]  }
   0x1 LB: > { %s1925_s10 = sadd.s32 4294967295, %s2203_s30   ;;  %p1929_p0 = scmp.ge.s32.totalorder %s2203_s30, 1  ;;  %s2203_s30 = sphi %s2258_s30, %s19_s30  }
   0x2   : > { %p344_p1 = scmp.lt.s32.totalorder %s2203_s30, 6 }
   0x4   : > { %p345_p2 = pnand %p1929_p0, %p344_p1 }
   0x5   : > { %p406_p3 = scmp.lt.s32.totalorder (!%p345_p2), %s1925_s10, 4 }
   0x6   : > { %348 = sbr.rel (%p345_p2) target bundleno = 1175 (0x497), region = 56 }
   0xb   : > { %v443_v0 = vld [vmem:[%s2510_s0] sm:$0xff]  ;;  %v444_v1 = vld [vmem:[%s2510_s0 + $0x8] sm:$0xff]  ;;  %vm478_vm0 = vcmask 392192   ;;  %s2521_s10 = smov (!%p406_p3, %s1925_s10), 4  ;;  %v445_v6 = vld [vmem:[%s2510_s0 + $0x10] sm:$0xff]  ;;  %vm557_vm1 = vcmask 261120  }
   0xc   : > { %v447_v2 = vpack.c.bf16 %v444_v1, %v443_v0  ;;  %s2155_s15 = smul.u32 24, %s2521_s10  ;;  %v446_v7 = vld [vmem:[%s2510_s0 + $0x18] sm:$0xff]  ;;  %s1999_s27 = sshll.u32 %s2521_s10, 4  ;;  %vm712_vm6 = vcmask 1042432   ;;  %vm691_vm7 = vcmask 1043456   ;;  %vm867_vm8 = vcmask 1041408  }
   0xd   : > { %s2156_s16 = smul.u32 144, %s2521_s10  ;;  %v448_v8 = vpack.c.bf16 %v446_v7, %v445_v6  ;;  %s415_s11 = scalar_lea.vmem %s2513_s3, %s1999_s27  ;;  %vm959_vm9 = vcmask 1040384   ;;  %vm1124_vm10 = vcmask 1046528   ;;  %vm1216_vm11 = vcmask 1045504  }
   0xe   : > { %2058 = vmatprep.mubr.msk.bf16.mxu0 %vm478_vm0, %v447_v2  ;;  %s410_s19 = scalar_lea.vmem %s2512_s2, %s2155_s15  ;;  %v2171_v9 = vld [vmem:[%s415_s11 + $0x8] sm:$0xff]   ;;  %v2172_v10 = vld [vmem:[%s415_s11] sm:$0xff]   ;;  %s2299_s14 = scalar_lea.vmem %s2515_s5, %s1999_s27  ;;  %vm1308_vm12 = vcmask 1044480   ;;  %vm1644_vm13 = vcmask 64512   ;;  %vm2206_vm14 = vmmov 0  }
   0xf   : > { %v2168_v3 = vld [vmem:[%s410_s19 + $0x10] sm:$0xff]   ;;  %v2169_v4 = vld [vmem:[%s410_s19 + $0x8] sm:$0xff]   ;;  %s2283_s22 = scalar_lea.vmem %s2514_s4, %s2156_s16  ;;  %v2170_v5 = vld [vmem:[%s410_s19] sm:$0xff]   ;;  %2062 = vmatprep.subr.bf16.mxu1 %v2171_v9  ;;  %s1936_s15 = sshll.u32 %s2521_s10, 3 }
  0x10   : > { %2052 = vmatprep.subr.bf16.mxu0 %v2168_v3  ;;  %2063 = vmatpush3.bf16.msra.mxu1 %v2171_v9  ;;  %s2307_s18 = scalar_lea.vmem %s2517_s7, %s1936_s15  ;;  %v2173_v22 = vld [vmem:[%s2283_s22 + $0x18] sm:$0xff]   ;;  %v2174_v23 = vld [vmem:[%s2283_s22 + $0x8] sm:$0xff]   ;;  %v2175_v24 = vld [vmem:[%s2283_s22 + $0x10] sm:$0xff]   ;;  %s429_s21 = scalar_lea.vmem %s2516_s6, %s1936_s15 }
  0x11   : > { %2053 = vmatpush3.bf16.msra.mxu0 %v2168_v3  ;;  %2064 = vmatprep.subr.bf16.mxu1 %v2172_v10  ;;  %v1940_v14 = vld [vmem:[%s2307_s18] ss:$0 sm:$0xff]  ;;  %v2317_v26 = vld [vmem:[%s2283_s22 + $0x28] sm:$0xff]   ;;  %v2320_v27 = vld [vmem:[%s2283_s22 + $0x38] sm:$0xff]   ;;  %s1938_s24 = sshll.u32 %s2521_s10, 1 }
  0x12   : > { %2054 = vmatprep.subr.bf16.mxu0 %v2169_v4  ;;  %v2176_v25 = vld [vmem:[%s2283_s22] sm:$0xff]   ;;  %s437_s27 = scalar_lea.vmem %s2518_s8, %s1938_s24  ;;  %s441_s11 = scalar_lea.vmem %s2519_s9, %s1938_s24 }
  0x13   : > { %v1946_v30 = vld [vmem:[%s2307_s18 + $0x1] ss:$0 sm:$0xff] }
  0x14   : > { %2065 = vmatpush3.bf16.msra.mxu1 %v2172_v10  ;;  %v654_v10 = vlaneseq }
  0x15   : > { %2055 = vmatpush3.bf16.msra.mxu0 %v2169_v4  ;;  %2070 = vmatprep.subr.bf16.mxu1 %v2173_v22 }
  0x16   : > { %2056 = vmatprep.subr.bf16.mxu0 %v2170_v5 }
  0x19   : > { %2057 = vmatpush3.bf16.msra.mxu0 %v2170_v5 }
  0x1a   : > { %2078 = vmatprep.subr.bf16.mxu0 %v2174_v23 }
  0x1c   : > { %2059 = vmatmul.mubr.msk.bf16.vlgmr.msra.gmra.mxu0 %vm478_vm0, %v448_v8 }
  0x1d   : > { %2079 = vmatpush3.bf16.msra.mxu0 %v2174_v23 }
  0x1e   : > { %2080 = vmatprep.subr.bf16.mxu0 %v2176_v25 }
  0x21   : > { %2081 = vmatpush3.bf16.msra.mxu0 %v2176_v25 }
  0x22   : > { %2094 = vmatprep.subr.bf16.mxu0 %v2320_v27 }
  0xdc   : > { %v2060_v11 = vpop.f32.mrf.mxu0 }
  0xdd   : > { %v528_v19 = vadd.f32 %v2060_v11, %v1940_v14  ;;  %v2334_v11 = vshrl.u32 %v654_v10, 7 }
  0xde   : > { %v519_v12 = vpop.f32.mrf.mxu0 }
  0xdf   : > { %v520_v17 = vadd.f32 %v1940_v14, %v519_v12  ;;  %v650_v12 = vld [vmem:[%s2307_s18 + $0x2] sm:$0x1] }
  0xe0   : > { %v2061_v13 = vpop.f32.mrf.mxu0 }
  0xe1   : > { %v531_v15 = vadd.f32 %v2061_v13, %v1940_v14  ;;  %v2338_v13 = vsub.s32 0, %v2334_v11 }
  0xe2   : > { %v522_v16 = vpop.f32.mrf.mxu0 }
  0xe3   : > { %v523_v18 = vadd.f32 %v1940_v14, %v522_v16  ;;  %v535_v21 = vpack.c.bf16 %v531_v15, %v528_v19 }
  0xe5   : > { %v534_v20 = vpack.c.bf16 %v523_v18, %v520_v17  ;;  %v1951_v17 = vld [vmem:[%s2307_s18 + $0x3] ss:$0 sm:$0xff] }
  0xe7   : > { %2066 = vmatprep.mubr.msk.bf16.mxu1 %vm557_vm1, %v534_v20 }
  0xe8   : > { %2067 = vmatmul.mubr.msk.bf16.vlgmr.msra.gmra.mxu1 %vm557_vm1, %v535_v21 }
  0xe9   : > { %2071 = vmatpush3.bf16.msra.mxu1 %v2173_v22 }
  0xea   : > { %2072 = vmatprep.subr.bf16.mxu1 %v2175_v24 }
  0xed   : > { %2073 = vmatpush3.bf16.msra.mxu1 %v2175_v24 }
  0xee   : > { %2086 = vmatprep.subr.bf16.mxu1 %v2317_v26 }
 0x1a8   : > { %v2068_v28 = vpop.f32.mrf.mxu1 }
 0x1a9   : > { %v607_v34 = vadd.f32 %v2068_v28, %v1946_v30 }
 0x1aa   : > { %v598_v29 = vpop.f32.mrf.mxu1 }
 0x1ab   : > { %v599_v32 = vadd.f32 %v1946_v30, %v598_v29  ;;  %v616_v40 = vsel %vm557_vm1, %v607_v34, 0.0 }
 0x1ac   : > { %v2069_v31 = vpop.f32.mrf.mxu1 }
 0x1ad   : > { %v613_v36 = vsel %vm557_vm1, %v599_v32, 0.0  ;;  %v610_v37 = vadd.f32 %v2069_v31, %v1946_v30 }
 0x1ae   : > { %v601_v33 = vpop.f32.mrf.mxu1 }
 0x1af   : > { %v602_v35 = vadd.f32 %v1946_v30, %v601_v33  ;;  %v618_v42 = vsel %vm557_vm1, %v610_v37, 0.0 }
 0x1b1   : > { %v614_v38 = vsel %vm557_vm1, %v602_v35, 0.0 }
 0x1b2   : > { %v615_v39 = vadd.f32 %v614_v38, %v613_v36 }
 0x1b4   : > { %v617_v41 = vadd.f32 %v616_v40, %v615_v39 }
 0x1b6   : > { %v619_v43 = vadd.f32 %v618_v42, %v617_v41 }
 0x1b8   : > { %v620_v44 = vrot.slane %v619_v43, 4 }
 0x1ba   : > { %v621_v45 = vadd.f32 %v620_v44, %v619_v43 }
 0x1bc   : > { %v622_v46 = vrot.slane %v621_v45, 2 }
 0x1be   : > { %v623_v47 = vadd.f32 %v622_v46, %v621_v45 }
 0x1c0   : > { %v624_v48 = vrot.slane %v623_v47, 1 }
 0x1c2   : > { %v625_v49 = vadd.f32 %v624_v48, %v623_v47 }
 0x1c4   : > { %v627_v50 = vmul.f32 0.03125, %v625_v49 }
 0x1c6   : > { %v628_v51 = vsub.f32 %v599_v32, %v627_v50  ;;  %v629_v52 = vsub.f32 %v602_v35, %v627_v50  ;;  %v630_v53 = vsub.f32 %v607_v34, %v627_v50  ;;  %v631_v54 = vsub.f32 %v610_v37, %v627_v50 }
 0x1c8   : > { %v632_v55 = vmul.f32 %v628_v51, %v628_v51  ;;  %v633_v56 = vmul.f32 %v629_v52, %v629_v52  ;;  %v634_v57 = vmul.f32 %v630_v53, %v630_v53  ;;  %v635_v58 = vmul.f32 %v631_v54, %v631_v54 }
 0x1ca   : > { %v636_v59 = vsel %vm557_vm1, %v632_v55, 0.0  ;;  %v637_v60 = vsel %vm557_vm1, %v633_v56, 0.0  ;;  %v639_v62 = vsel %vm557_vm1, %v634_v57, 0.0  ;;  %v641_v0 = vsel %vm557_vm1, %v635_v58, 0.0 }
 0x1cb   : > { %v638_v61 = vadd.f32 %v637_v60, %v636_v59  ;;  %v2179_v59 = vld [vmem:[%s2283_s22 + $0x20] sm:$0xff]   ;;  %v2180_v60 = vld [vmem:[%s2283_s22 + $0x30] sm:$0xff]  }
 0x1cd   : > { %v640_v63 = vadd.f32 %v639_v62, %v638_v61 }
 0x1cf   : > { %v642_v1 = vadd.f32 %v641_v0, %v640_v63 }
 0x1d1   : > { %v643_v2 = vrot.slane %v642_v1, 4 }
 0x1d3   : > { %v644_v3 = vadd.f32 %v643_v2, %v642_v1 }
 0x1d5   : > { %v645_v4 = vrot.slane %v644_v3, 2 }
 0x1d7   : > { %v646_v5 = vadd.f32 %v645_v4, %v644_v3 }
 0x1d9   : > { %v647_v6 = vrot.slane %v646_v5, 1 }
 0x1db   : > { %v648_v7 = vadd.f32 %v647_v6, %v646_v5 }
 0x1dd   : > { %v649_v8 = vmul.f32 0.03125, %v648_v7 }
 0x1df   : > { %v651_v9 = vadd.f32 1e-05, %v649_v8 }
 0x1e1   : > { %2193 = vrsqrt.f32 %v651_v9  ;;  %v2181_v9 = vld [vmem:[%s2283_s22 + $0x48] sm:$0xff]  }
 0x1ee   : > { %v2194_v14 = vpop.eup %2193 }
 0x1ef   : > { %v653_v15 = vmul.f32 %v2194_v14, %v650_v12  ;;  %v2182_v12 = vld [vmem:[%s2283_s22 + $0x58] sm:$0xff]  }
 0x1f1   : > { %v657_v16 = vrot.slane %v653_v15, %v2338_v13 }
 0x1f3   : > { %v658_v18 = vmul.f32 %v657_v16, %v628_v51  ;;  %v659_v19 = vmul.f32 %v657_v16, %v629_v52  ;;  %v660_v20 = vmul.f32 %v657_v16, %v630_v53  ;;  %v661_v21 = vmul.f32 %v657_v16, %v631_v54 }
 0x1f5   : > { %v667_v22 = vadd.f32 %v1951_v17, %v658_v18  ;;  %v668_v23 = vadd.f32 %v1951_v17, %v659_v19  ;;  %v669_v24 = vadd.f32 %v1951_v17, %v660_v20  ;;  %v670_v25 = vadd.f32 %v1951_v17, %v661_v21 }
 0x1f7   : > { %vm671_vm2 = vcmp.gt.f32.partialorder %v667_v22, 0.0  ;;  %vm672_vm3 = vcmp.gt.f32.partialorder %v668_v23, 0.0  ;;  %vm673_vm4 = vcmp.gt.f32.partialorder %v669_v24, 0.0  ;;  %vm674_vm5 = vcmp.gt.f32.partialorder %v670_v25, 0.0 }
 0x1f8   : > { %v675_v28 = vmul.f32 0.2, %v667_v22  ;;  %v676_v29 = vmul.f32 0.2, %v668_v23  ;;  %v677_v30 = vmul.f32 0.2, %v669_v24 }
 0x1f9   : > { %v678_v31 = vmul.f32 0.2, %v670_v25 }
 0x1fa   : > { %v2342_v32 = vsel %vm671_vm2, %v667_v22, %v675_v28  ;;  %v2344_v33 = vsel %vm672_vm3, %v668_v23, %v676_v29  ;;  %v2346_v34 = vsel %vm673_vm4, %v669_v24, %v677_v30  ;;  %v2183_v22 = vld [vmem:[%s2283_s22 + $0x40] sm:$0xff]   ;;  %v2184_v23 = vld [vmem:[%s2283_s22 + $0x50] sm:$0xff]   ;;  %vm1783_vm4 = vcmask 130112  }
 0x1fb   : > { %v2348_v35 = vsel %vm674_vm5, %v670_v25, %v678_v31  ;;  %v708_v36 = vrot.slane %v2344_v33, 5  ;;  %v713_v37 = vrot.slane %v2342_v32, 5  ;;  %v685_v38 = vrot.slane %v2344_v33, 4  ;;  %v2185_v31 = vld [vmem:[%s2283_s22 + $0x68] sm:$0xff]  }
 0x1fc   : > { %v692_v39 = vrot.slane %v2342_v32, 4  ;;  %v709_v40 = vrot.slane %v2348_v35, 5  ;;  %v715_v41 = vrot.slane %v2346_v34, 5  ;;  %v686_v42 = vrot.slane %v2348_v35, 4 }
 0x1fd   : > { %v714_v43 = vsel %vm712_vm6, %v713_v37, %v708_v36  ;;  %v721_v44 = vsel %vm712_vm6, %v708_v36, %v713_v37  ;;  %v694_v45 = vrot.slane %v2346_v34, 4  ;;  %v863_v46 = vrot.slane %v2344_v33, 6 }
 0x1fe   : > { %v723_v47 = vpack.c.bf16 %v714_v43, %v721_v44  ;;  %v2362_v48 = vsel %vm691_vm7, %v692_v39, %v685_v38  ;;  %v2365_v49 = vsel %vm691_vm7, %v685_v38, %v692_v39  ;;  %v716_v50 = vsel %vm712_vm6, %v715_v41, %v709_v40  ;;  %v2186_v38 = vld [vmem:[%s2283_s22 + $0x78] sm:$0xff]  }
 0x1ff   : > { %v702_v51 = vpack.c.bf16 %v2362_v48, %v2365_v49  ;;  %v722_v52 = vsel %vm712_vm6, %v709_v40, %v715_v41  ;;  %v2372_v53 = vsel %vm691_vm7, %v694_v45, %v686_v42  ;;  %v2375_v54 = vsel %vm691_vm7, %v686_v42, %v694_v45 }
 0x200   : > { %2074 = vmatprep.mubr.msk.bf16.mxu1 %vm557_vm1, %v723_v47  ;;  %v724_v55 = vpack.c.bf16 %v716_v50, %v722_v52  ;;  %v703_v56 = vpack.c.bf16 %v2372_v53, %v2375_v54  ;;  %v868_v57 = vrot.slane %v2342_v32, 6  ;;  %v955_v58 = vrot.slane %v2344_v33, 7  ;;  %v2187_v47 = vld [vmem:[%s2283_s22 + $0x60] sm:$0xff]  }
 0x201   : > { %2082 = vmatprep.mubr.msk.bf16.mxu0 %vm557_vm1, %v702_v51  ;;  %v960_v61 = vrot.slane %v2342_v32, 7  ;;  %v864_v62 = vrot.slane %v2348_v35, 6  ;;  %v870_v63 = vrot.slane %v2346_v34, 6  ;;  %v956_v0 = vrot.slane %v2348_v35, 7 }
 0x202   : > { %2075 = vmatmul.mubr.msk.bf16.vlgmr.msra.gmra.mxu1 %vm557_vm1, %v724_v55  ;;  %2083 = vmatmul.mubr.msk.bf16.vlgmr.msra.gmra.mxu0 %vm557_vm1, %v703_v56  ;;  %v869_v1 = vsel %vm867_vm8, %v868_v57, %v863_v46  ;;  %v876_v2 = vsel %vm867_vm8, %v863_v46, %v868_v57  ;;  %v962_v3 = vrot.slane %v2346_v34, 7  ;;  %v1125_v7 = vrot.slane %v2342_v32, 1  ;;  %v2188_v55 = vld [vmem:[%s2283_s22 + $0x70] sm:$0xff]  }
 0x203   : > { %2087 = vmatpush3.bf16.msra.mxu1 %v2317_v26  ;;  %v878_v4 = vpack.c.bf16 %v869_v1, %v876_v2  ;;  %2095 = vmatpush3.bf16.msra.mxu0 %v2320_v27  ;;  %v961_v5 = vsel %vm959_vm9, %v960_v61, %v955_v58  ;;  %v968_v6 = vsel %vm959_vm9, %v955_v58, %v960_v61  ;;  %v1126_v14 = vrot.slane %v2344_v33, 1  ;;  %v2190_v1 = vld [vmem:[%s2283_s22 + $0x80] sm:$0xff]  }
 0x204   : > { %v970_v8 = vpack.c.bf16 %v961_v5, %v968_v6  ;;  %2088 = vmatprep.subr.bf16.mxu1 %v2179_v59  ;;  %2096 = vmatprep.subr.bf16.mxu0 %v2180_v60  ;;  %v871_v26 = vsel %vm867_vm8, %v870_v63, %v864_v62  ;;  %v877_v27 = vsel %vm867_vm8, %v864_v62, %v870_v63  ;;  %v1128_v25 = vrot.slane %v2346_v34, 1  ;;  %v2191_v5 = vld [vmem:[%s2299_s14 + $0x8] sm:$0xff]   ;;  %v1638_v6 = vld [vmem:[%s429_s21] sm:$0xff] }
 0x205   : > { %2090 = vmatprep.mubr.msk.bf16.mxu1 %vm557_vm1, %v878_v4  ;;  %v963_v15 = vsel %vm959_vm9, %v962_v3, %v956_v0  ;;  %v969_v16 = vsel %vm959_vm9, %v956_v0, %v962_v3  ;;  %v1127_v17 = vsel %vm1124_vm10, %v1125_v7, %v1126_v14  ;;  %v1137_v18 = vsel %vm1124_vm10, %v1126_v14, %v1125_v7  ;;  %v2192_v7 = vld [vmem:[%s2299_s14] sm:$0xff]  }
 0x206   : > { %2098 = vmatprep.mubr.msk.bf16.mxu0 %vm557_vm1, %v970_v8  ;;  %v879_v19 = vpack.c.bf16 %v871_v26, %v877_v27  ;;  %v971_v20 = vpack.c.bf16 %v963_v15, %v969_v16  ;;  %v1047_v21 = vpack.c.bf16 %v2344_v33, %v2342_v32  ;;  %v1139_v24 = vpack.c.bf16 %v1137_v18, %v1127_v17 }
 0x207   : > { %2089 = vmatpush3.bf16.msra.mxu1 %v2179_v59  ;;  %2097 = vmatpush3.bf16.msra.mxu0 %v2180_v60  ;;  %v1129_v28 = vrot.slane %v2348_v35, 1  ;;  %v1217_v29 = vrot.slane %v2342_v32, 2  ;;  %v1218_v30 = vrot.slane %v2344_v33, 2  ;;  %v1309_v36 = vrot.slane %v2342_v32, 3  ;;  %v2189_v59 = vld [vmem:[%s2283_s22 + $0x88] sm:$0xff]  }
 0x208   : > { %2102 = vmatprep.subr.bf16.mxu1 %v2181_v9  ;;  %2110 = vmatprep.subr.bf16.mxu0 %v2182_v12  ;;  %v1310_v37 = vrot.slane %v2344_v33, 3  ;;  %v1048_v43 = vpack.c.bf16 %v2348_v35, %v2346_v34  ;;  %v1220_v50 = vrot.slane %v2346_v34, 2  ;;  %v1221_v51 = vrot.slane %v2348_v35, 2 }
 0x209   : > { %v1130_v39 = vsel %vm1124_vm10, %v1128_v25, %v1129_v28  ;;  %v1138_v40 = vsel %vm1124_vm10, %v1129_v28, %v1128_v25  ;;  %v1219_v41 = vsel %vm1216_vm11, %v1217_v29, %v1218_v30  ;;  %v1229_v42 = vsel %vm1216_vm11, %v1218_v30, %v1217_v29 }
 0x20a   : > { %2091 = vmatmul.mubr.msk.bf16.vlgmr.msra.gmra.mxu1 %vm557_vm1, %v879_v19  ;;  %2099 = vmatmul.mubr.msk.bf16.vlgmr.msra.gmra.mxu0 %vm557_vm1, %v971_v20  ;;  %v1311_v44 = vsel %vm1308_vm12, %v1309_v36, %v1310_v37  ;;  %v1321_v45 = vsel %vm1308_vm12, %v1310_v37, %v1309_v36  ;;  %v1140_v46 = vpack.c.bf16 %v1138_v40, %v1130_v39  ;;  %v1312_v56 = vrot.slane %v2346_v34, 3 }
 0x20b   : > { %2103 = vmatpush3.bf16.msra.mxu1 %v2181_v9  ;;  %2106 = vmatprep.mubr.msk.bf16.mxu1 %vm557_vm1, %v1047_v21  ;;  %v1231_v52 = vpack.c.bf16 %v1229_v42, %v1219_v41  ;;  %v1313_v57 = vrot.slane %v2348_v35, 3  ;;  %v1323_v58 = vpack.c.bf16 %v1321_v45, %v1311_v44  ;;  %v1222_v60 = vsel %vm1216_vm11, %v1220_v50, %v1221_v51 }
 0x20c   : > { %2111 = vmatpush3.bf16.msra.mxu0 %v2182_v12  ;;  %2114 = vmatprep.mubr.msk.bf16.mxu0 %vm557_vm1, %v1139_v24  ;;  %v1230_v61 = vsel %vm1216_vm11, %v1221_v51, %v1220_v50  ;;  %v1400_v3 = vpack.c.bf16 %v2365_v49, %v2362_v48  ;;  %v1401_v4 = vpack.c.bf16 %v2375_v54, %v2372_v53  ;;  %v1637_v48 = vld [vmem:[%s2511_s1] sm:$0x3]  ;;  %v2205_v49 = vmov 0.0  }
 0x20d   : > { %2104 = vmatprep.subr.bf16.mxu1 %v2183_v22  ;;  %2112 = vmatprep.subr.bf16.mxu0 %v2184_v23  ;;  %v1314_v62 = vsel %vm1308_vm12, %v1312_v56, %v1313_v57  ;;  %v1322_v63 = vsel %vm1308_vm12, %v1313_v57, %v1312_v56  ;;  %v1232_v0 = vpack.c.bf16 %v1230_v61, %v1222_v60  ;;  %vm1794_vm5 = vcmask 1041409  }
 0x20e   : > { %v1324_v2 = vpack.c.bf16 %v1322_v63, %v1314_v62  ;;  %vm1797_vm6 = vcmask 130048  }
 0x20f   : > { %2105 = vmatpush3.bf16.msra.mxu1 %v2183_v22 }
 0x210   : > { %2113 = vmatpush3.bf16.msra.mxu0 %v2184_v23  ;;  %2118 = vmatprep.subr.bf16.mxu1 %v2185_v31 }
 0x211   : > { %2126 = vmatprep.subr.bf16.mxu0 %v2186_v38 }
 0x212   : > { %2107 = vmatmul.mubr.msk.bf16.vlgmr.msra.gmra.mxu1 %vm557_vm1, %v1048_v43 }
 0x213   : > { %2115 = vmatmul.mubr.msk.bf16.vlgmr.msra.gmra.mxu0 %vm557_vm1, %v1140_v46  ;;  %2119 = vmatpush3.bf16.msra.mxu1 %v2185_v31 }
 0x214   : > { %2122 = vmatprep.mubr.msk.bf16.mxu1 %vm557_vm1, %v1231_v52  ;;  %2127 = vmatpush3.bf16.msra.mxu0 %v2186_v38 }
 0x215   : > { %2130 = vmatprep.mubr.msk.bf16.mxu0 %vm557_vm1, %v1323_v58  ;;  %2120 = vmatprep.subr.bf16.mxu1 %v2187_v47 }
 0x216   : > { %2128 = vmatprep.subr.bf16.mxu0 %v2188_v55 }
 0x217   : > { %2121 = vmatpush3.bf16.msra.mxu1 %v2187_v47 }
 0x218   : > { %2129 = vmatpush3.bf16.msra.mxu0 %v2188_v55  ;;  %2134 = vmatprep.subr.bf16.mxu1 %v2189_v59 }
 0x219   : > { %2142 = vmatprep.subr.bf16.mxu0 %v2191_v5 }
 0x21a   : > { %2123 = vmatmul.mubr.msk.bf16.vlgmr.msra.gmra.mxu1 %vm557_vm1, %v1232_v0 }
 0x21b   : > { %2131 = vmatmul.mubr.msk.bf16.vlgmr.msra.gmra.mxu0 %vm557_vm1, %v1324_v2  ;;  %2135 = vmatpush3.bf16.msra.mxu1 %v2189_v59 }
 0x21c   : > { %2138 = vmatprep.mubr.msk.bf16.mxu1 %vm557_vm1, %v1400_v3  ;;  %2136 = vmatprep.subr.bf16.mxu1 %v2190_v1 }
 0x21d   : > { %2143 = vmatpush3.bf16.msra.mxu0 %v2191_v5 }
 0x21e   : > { %2144 = vmatprep.subr.bf16.mxu0 %v2192_v7 }
 0x21f   : > { %2137 = vmatpush3.bf16.msra.mxu1 %v2190_v1 }
 0x220   : > { %2150 = vmatprep.subr.mxu1 %v2205_v49 }
 0x221   : > { %2145 = vmatpush3.bf16.msra.mxu0 %v2192_v7 }
 0x222   : > { %2139 = vmatmul.mubr.msk.bf16.vlgmr.msra.gmra.mxu1 %vm557_vm1, %v1401_v4 }
 0x223   : > { %2152 = vmatprep.mubr.msk.f32.mxu1 %vm2206_vm14, %v2205_v49  ;;  %2151 = vmatpush3.msra.mxu1 %v1638_v6 }
 0x22a   : > { %2153 = vmatmul.mubr.msk.f32.vlgmr.msra.gmra.mxu1 %vm1644_vm13, %v1637_v48 }
 0x2c2   : > { %v2076_v53 = vpop.f32.mrf.mxu1  ;;  %v2084_v54 = vpop.f32.mrf.mxu0 }
 0x2c3   : > { %v857_v25 = vadd.f32 %v2084_v54, %v2076_v53 }
 0x2c4   : > { %v781_v8 = vpop.f32.mrf.mxu1  ;;  %v848_v9 = vpop.f32.mrf.mxu0 }
 0x2c5   : > { %v849_v23 = vadd.f32 %v848_v9, %v781_v8 }
 0x2c6   : > { %v2077_v12 = vpop.f32.mrf.mxu1  ;;  %v2085_v14 = vpop.f32.mrf.mxu0 }
 0x2c7   : > { %v860_v31 = vadd.f32 %v2085_v14, %v2077_v12 }
 0x2c8   : > { %v784_v26 = vpop.f32.mrf.mxu1  ;;  %v851_v27 = vpop.f32.mrf.mxu0 }
 0x2c9   : > { %v852_v36 = vadd.f32 %v851_v27, %v784_v26 }
 0x2ca   : > { %v2092_v15 = vpop.f32.mrf.mxu1  ;;  %v2100_v16 = vpop.f32.mrf.mxu0 }
 0x2cb   : > { %v953_v37 = vadd.f32 %v2092_v15, %v857_v25  ;;  %v1988_v15 = vld [vmem:[%s2307_s18 + $0x4] ss:$0 sm:$0xff] }
 0x2cc   : > { %v936_v17 = vpop.f32.mrf.mxu1  ;;  %v1028_v18 = vpop.f32.mrf.mxu0 }
 0x2cd   : > { %v951_v28 = vadd.f32 %v936_v17, %v849_v23  ;;  %v1045_v45 = vadd.f32 %v2100_v16, %v953_v37 }
 0x2ce   : > { %v2093_v19 = vpop.f32.mrf.mxu1  ;;  %v2101_v20 = vpop.f32.mrf.mxu0 }
 0x2cf   : > { %v1043_v40 = vadd.f32 %v1028_v18, %v951_v28  ;;  %v954_v41 = vadd.f32 %v2093_v19, %v860_v31 }
 0x2d0   : > { %v939_v21 = vpop.f32.mrf.mxu1  ;;  %v1031_v22 = vpop.f32.mrf.mxu0 }
 0x2d1   : > { %v952_v42 = vadd.f32 %v939_v21, %v852_v36  ;;  %v1046_v51 = vadd.f32 %v2101_v20, %v954_v41 }
 0x2d2   : > { %v2108_v24 = vpop.f32.mrf.mxu1 }
 0x2d3   : > { %v2116_v29 = vpop.f32.mrf.mxu0  ;;  %v1044_v52 = vadd.f32 %v1031_v22, %v952_v42  ;;  %v1122_v55 = vadd.f32 %v2108_v24, %v1045_v45 }
 0x2d4   : > { %v1105_v30 = vpop.f32.mrf.mxu1 }
 0x2d5   : > { %v1197_v38 = vpop.f32.mrf.mxu0  ;;  %v1120_v46 = vadd.f32 %v1105_v30, %v1043_v40  ;;  %v1214_v63 = vadd.f32 %v2116_v29, %v1122_v55 }
 0x2d6   : > { %v2109_v39 = vpop.f32.mrf.mxu1 }
 0x2d7   : > { %v2117_v43 = vpop.f32.mrf.mxu0  ;;  %v1212_v58 = vadd.f32 %v1197_v38, %v1120_v46  ;;  %v1123_v59 = vadd.f32 %v2109_v39, %v1046_v51 }
 0x2d8   : > { %v1108_v44 = vpop.f32.mrf.mxu1 }
 0x2d9   : > { %v1200_v47 = vpop.f32.mrf.mxu0  ;;  %v1121_v60 = vadd.f32 %v1108_v44, %v1044_v52  ;;  %v1215_v2 = vadd.f32 %v2117_v43, %v1123_v59 }
 0x2da   : > { %v2124_v50 = vpop.f32.mrf.mxu1 }
 0x2db   : > { %v2132_v56 = vpop.f32.mrf.mxu0  ;;  %v1213_v3 = vadd.f32 %v1200_v47, %v1121_v60  ;;  %v1306_v4 = vadd.f32 %v2124_v50, %v1214_v63 }
 0x2dc   : > { %v1289_v57 = vpop.f32.mrf.mxu1 }
 0x2dd   : > { %v1381_v61 = vpop.f32.mrf.mxu0  ;;  %v1304_v0 = vadd.f32 %v1289_v57, %v1212_v58  ;;  %v1398_v54 = vadd.f32 %v2132_v56, %v1306_v4 }
 0x2de   : > { %v2125_v62 = vpop.f32.mrf.mxu1 }
 0x2df   : > { %v2133_v5 = vpop.f32.mrf.mxu0  ;;  %v1396_v49 = vadd.f32 %v1381_v61, %v1304_v0  ;;  %v1307_v6 = vadd.f32 %v2125_v62, %v1215_v2 }
 0x2e0   : > { %v1292_v1 = vpop.f32.mrf.mxu1 }
 0x2e1   : > { %v1305_v7 = vadd.f32 %v1292_v1, %v1213_v3  ;;  %v1384_v9 = vpop.f32.mrf.mxu0  ;;  %v1399_v14 = vadd.f32 %v2133_v5, %v1307_v6 }
 0x2e2   : > { %v2140_v48 = vpop.f32.mrf.mxu1 }
 0x2e3   : > { %v1397_v26 = vadd.f32 %v1384_v9, %v1305_v7  ;;  %v1475_v27 = vadd.f32 %v2140_v48, %v1398_v54  ;;  %v1522_v48 = vld [vmem:[%s2307_s18 + $0x5] sm:$0x1] }
 0x2e4   : > { %v1458_v53 = vpop.f32.mrf.mxu1 }
 0x2e5   : > { %v1473_v8 = vadd.f32 %v1458_v53, %v1396_v49  ;;  %v1484_v20 = vadd.f32 %v1988_v15, %v1475_v27  ;;  %v1989_v53 = vld [vmem:[%s2307_s18 + $0x6] ss:$0 sm:$0xff] }
 0x2e6   : > { %v2141_v12 = vpop.f32.mrf.mxu1 }
 0x2e7   : > { %v1482_v17 = vadd.f32 %v1988_v15, %v1473_v8  ;;  %v1476_v18 = vadd.f32 %v2141_v12, %v1399_v14  ;;  %v1489_v28 = vsel %vm557_vm1, %v1484_v20, 0.0 }
 0x2e8   : > { %v1461_v16 = vpop.f32.mrf.mxu1 }
 0x2e9   : > { %v1474_v19 = vadd.f32 %v1461_v16, %v1397_v26  ;;  %v1486_v22 = vsel %vm557_vm1, %v1482_v17, 0.0  ;;  %v1485_v23 = vadd.f32 %v1988_v15, %v1476_v18 }
 0x2eb   : > { %v1483_v21 = vadd.f32 %v1988_v15, %v1474_v19  ;;  %v1491_v30 = vsel %vm557_vm1, %v1485_v23, 0.0 }
 0x2ed   : > { %v1487_v24 = vsel %vm557_vm1, %v1483_v21, 0.0 }
 0x2ee   : > { %v1488_v25 = vadd.f32 %v1487_v24, %v1486_v22 }
 0x2f0   : > { %v1490_v29 = vadd.f32 %v1489_v28, %v1488_v25 }
 0x2f2   : > { %v1492_v31 = vadd.f32 %v1491_v30, %v1490_v29 }
 0x2f4   : > { %v1493_v36 = vrot.slane %v1492_v31, 4 }
 0x2f6   : > { %v1494_v37 = vadd.f32 %v1493_v36, %v1492_v31  ;;  %v1714_v36 = vpop.f32.mrf.mxu1 }
 0x2f8   : > { %v1495_v38 = vrot.slane %v1494_v37, 2 }
 0x2fa   : > { %v1496_v39 = vadd.f32 %v1495_v38, %v1494_v37  ;;  %v2154_v37 = vpop.f32.mrf.mxu1  ;;  %v2207_v38 = vmov 1966171168  }
 0x2fc   : > { %v1497_v40 = vrot.slane %v1496_v39, 1 }
 0x2fe   : > { %v1498_v41 = vadd.f32 %v1497_v40, %v1496_v39  ;;  %v1720_v39 = vunpack.c.l.s4 %v2207_v38 }
 0x300   : > { %v1499_v42 = vmul.f32 0.03125, %v1498_v41 }
 0x302   : > { %v1500_v43 = vsub.f32 %v1482_v17, %v1499_v42  ;;  %v1501_v44 = vsub.f32 %v1483_v21, %v1499_v42  ;;  %v1502_v45 = vsub.f32 %v1484_v20, %v1499_v42  ;;  %v1503_v46 = vsub.f32 %v1485_v23, %v1499_v42 }
 0x304   : > { %v1504_v47 = vmul.f32 %v1500_v43, %v1500_v43  ;;  %v1505_v50 = vmul.f32 %v1501_v44, %v1501_v44  ;;  %v1506_v51 = vmul.f32 %v1502_v45, %v1502_v45  ;;  %v1507_v52 = vmul.f32 %v1503_v46, %v1503_v46 }
 0x306   : > { %v1508_v55 = vsel %vm557_vm1, %v1504_v47, 0.0  ;;  %v1509_v56 = vsel %vm557_vm1, %v1505_v50, 0.0  ;;  %v1511_v58 = vsel %vm557_vm1, %v1506_v51, 0.0  ;;  %v1513_v60 = vsel %vm557_vm1, %v1507_v52, 0.0 }
 0x307   : > { %v1510_v57 = vadd.f32 %v1509_v56, %v1508_v55 }
 0x309   : > { %v1512_v59 = vadd.f32 %v1511_v58, %v1510_v57 }
 0x30b   : > { %v1514_v61 = vadd.f32 %v1513_v60, %v1512_v59 }
 0x30d   : > { %v1515_v62 = vrot.slane %v1514_v61, 4 }
 0x30f   : > { %v1516_v63 = vadd.f32 %v1515_v62, %v1514_v61 }
 0x311   : > { %v1517_v0 = vrot.slane %v1516_v63, 2 }
 0x313   : > { %v1518_v1 = vadd.f32 %v1517_v0, %v1516_v63 }
 0x315   : > { %v1519_v2 = vrot.slane %v1518_v1, 1 }
 0x317   : > { %v1520_v3 = vadd.f32 %v1519_v2, %v1518_v1 }
 0x319   : > { %v1521_v4 = vmul.f32 0.03125, %v1520_v3 }
 0x31b   : > { %v1523_v5 = vadd.f32 1e-05, %v1521_v4 }
 0x31d   : > { %2195 = vrsqrt.f32 %v1523_v5 }
 0x32a   : > { %v2196_v49 = vpop.eup %2195 }
 0x32b   : > { %v1525_v6 = vmul.f32 %v2196_v49, %v1522_v48 }
 0x32d   : > { %v1529_v7 = vrot.slane %v1525_v6, %v2338_v13 }
 0x32f   : > { %v1530_v54 = vmul.f32 %v1529_v7, %v1500_v43  ;;  %v1531_v8 = vmul.f32 %v1529_v7, %v1501_v44  ;;  %v1532_v9 = vmul.f32 %v1529_v7, %v1502_v45  ;;  %v1533_v12 = vmul.f32 %v1529_v7, %v1503_v46  ;;  %v1990_v43 = vld [vmem:[%s437_s27] ss:$0 sm:$0xff] }
 0x331   : > { %v1540_v14 = vadd.f32 %v1989_v53, %v1531_v8  ;;  %v1541_v26 = vadd.f32 %v1989_v53, %v1532_v9  ;;  %v1542_v27 = vadd.f32 %v1989_v53, %v1533_v12  ;;  %v1539_v15 = vadd.f32 %v1989_v53, %v1530_v54 }
 0x333   : > { %v1548_v16 = vmul.f32 0.2, %v1540_v14  ;;  %vm1543_vm15 = vcmp.gt.f32.partialorder %v1539_v15, 0.0  ;;  %vm1544_vm0 = vcmp.gt.f32.partialorder %v1540_v14, 0.0  ;;  %v1547_v17 = vmul.f32 0.2, %v1539_v15 }
 0x334   : > { %vm1545_vm2 = vcmp.gt.f32.partialorder %v1541_v26, 0.0  ;;  %vm1546_vm3 = vcmp.gt.f32.partialorder %v1542_v27, 0.0  ;;  %v1549_v18 = vmul.f32 0.2, %v1541_v26  ;;  %v1550_v19 = vmul.f32 0.2, %v1542_v27 }
 0x335   : > { %v1551_v20 = vsel %vm1543_vm15, %v1539_v15, %v1547_v17  ;;  %v1552_v21 = vsel %vm1544_vm0, %v1540_v14, %v1548_v16 }
 0x336   : > { %v1555_v22 = vadd.f32 %v1551_v20, %v2342_v32  ;;  %v1556_v23 = vadd.f32 %v1552_v21, %v2344_v33  ;;  %v1553_v24 = vsel %vm1545_vm2, %v1541_v26, %v1549_v18  ;;  %v1554_v25 = vsel %vm1546_vm3, %v1542_v27, %v1550_v19  ;;  %v1995_v33 = vld [vmem:[%s437_s27 + $0x1] ss:$0 sm:$0xff] }
 0x337   : > { %v1557_v28 = vadd.f32 %v1553_v24, %v2346_v34  ;;  %v1558_v29 = vadd.f32 %v1554_v25, %v2348_v35  ;;  %v1721_v32 = vunpack.c.0.s8 %v1720_v39  ;;  %v1715_v34 = vadd.f32 %v1995_v33, %v1714_v36 }
 0x338   : > { %v1559_v30 = vpack.c.bf16 %v1556_v23, %v1555_v22 }
 0x339   : > { %v1560_v31 = vpack.c.bf16 %v1558_v29, %v1557_v28  ;;  %v1724_v35 = vsub.s32 %v1721_v32, %v2334_v11 }
 0x33a   : > { %2146 = vmatprep.mubr.msk.bf16.mxu0 %vm557_vm1, %v1559_v30 }
 0x33b   : > { %2147 = vmatmul.mubr.msk.bf16.vlgmr.msra.gmra.mxu0 %vm557_vm1, %v1560_v31  ;;  %v1725_v40 = vrot.slane %v1715_v34, %v1724_v35  ;;  %vm1755_vm1 = vcmask 523264  }
 0x33d   : > { %v1726_v41 = vcombine.high %v1725_v40, %v1725_v40  ;;  %v1733_v44 = vrot.slane %v1725_v40, %v1724_v35 }
 0x33f   : > { %v1740_v42 = vrot.slane %v1726_v41, %v1724_v35  ;;  %v1744_v55 = vrot.slane %v1733_v44, %v2338_v13 }
 0x341   : > { %v1748_v45 = vrot.slane %v1740_v42, %v2338_v13  ;;  %v1773_v13 = vand.u32 127, %v654_v10 }
 0x343   : > { %v1778_v3 = vadd.s32 4294967288, %v1773_v13  ;;  %v1776_v49 = vsub.s32 %v1773_v13, %v2334_v11 }
 0x345   : > { %v1781_v5 = vsub.s32 %v1778_v3, %v2334_v11 }
 0x3fb   : > { %v2148_v46 = vpop.f32.mrf.mxu0 }
 0x3fc   : > { %v1631_v47 = vadd.f32 %v2148_v46, %v1990_v43 }
 0x3fd   : > { %v1622_v50 = vpop.f32.mrf.mxu0 }
 0x3fe   : > { %v1623_v51 = vadd.f32 %v1990_v43, %v1622_v50  ;;  %v1753_v52 = vmul.f32 %v1748_v45, %v1631_v47 }
 0x3ff   : > { %v2149_v56 = vpop.f32.mrf.mxu0 }
 0x400   : > { %v1634_v57 = vadd.f32 %v2149_v56, %v1990_v43  ;;  %v1762_v58 = vsel %vm1755_vm1, %v1753_v52, 0.0  ;;  %v1751_v59 = vmul.f32 %v1744_v55, %v1623_v51 }
 0x401   : > { %1763 = vadd.xlane.f32.xlu1 %v1762_v58  ;;  %v1625_v60 = vpop.f32.mrf.mxu0 }
 0x402   : > { %v1626_v61 = vadd.f32 %v1990_v43, %v1625_v60  ;;  %v1756_v62 = vsel %vm1755_vm1, %v1751_v59, 0.0  ;;  %v1754_v63 = vmul.f32 %v1748_v45, %v1634_v57 }
 0x403   : > { %1757 = vadd.xlane.f32.xlu0 %v1756_v62 }
 0x404   : > { %v1765_v0 = vsel %vm1755_vm1, %v1754_v63, 0.0  ;;  %v1752_v1 = vmul.f32 %v1744_v55, %v1626_v61 }
 0x405   : > { %1766 = vadd.xlane.f32.xlu1 %v1765_v0 }
 0x406   : > { %v1759_v2 = vsel %vm1755_vm1, %v1752_v1, 0.0 }
 0x407   : > { %1760 = vadd.xlane.f32.xlu0 %v1759_v2 }
 0x48a   : > { %v1764_v4 = vpop.xlane.xlu1 %1763 }
 0x48b   : > { %v1788_v54 = vrot.slane %v1764_v4, %v1776_v49 }
 0x48c   : > { %v1758_v48 = vpop.xlane.xlu0 %1757 }
 0x48d   : > { %v1777_v8 = vrot.slane %v1758_v48, %v1776_v49 }
 0x48e   : > { %v1767_v6 = vpop.xlane.xlu1 %1766 }
 0x48f   : > { %v1792_v7 = vrot.slane %v1767_v6, %v1781_v5 }
 0x490   : > { %v1761_v53 = vpop.xlane.xlu0 %1760 }
 0x491   : > { %v1782_v9 = vrot.slane %v1761_v53, %v1781_v5  ;;  %v1793_v10 = vsel %vm1783_vm4, %v1792_v7, %v1788_v54 }
 0x493   : > { %v1784_v12 = vsel %vm1783_vm4, %v1782_v9, %v1777_v8 }
 0x494   : > { %v1795_v14 = vsel %vm1794_vm5, %v1793_v10, %v1784_v12 }
 0x495   : > { %v1798_v26 = vsel %vm1797_vm6, %v1795_v14, 0.0 }
 0x496   : > { %1799 = vst [vmem:[%s441_s11] sm:$0x3] %v1798_v26 }
 0x497 PF: > { %s19_s30 = sadd.s32 1, %s2203_s30  }
 0x498   : > { %p16_p4 = scmp.ge.s32.totalorder %s19_s30, 7  }
 0x49a   :  { %18 = sbr.rel (!%p16_p4) target bundleno = 1 (0x1), region = 104 }

</bundles_post_ra>
